<compile_context>
chip_gen: v7x
topology: tpu7x:2x2x1
jax: 0.10.0
libtpu: 0.0.40
codegen_flags: <defaults>
</compile_context>

<pallas_src>
import math

import jax
import jax.numpy as jnp
from jax.experimental import pallas as pl
from jax.experimental.pallas import tpu as pltpu


# ---------------------------------------------------------------------------
# Trace-time exponent specialization (a, b are static python floats)
# ---------------------------------------------------------------------------

_INT_POW_CAP = 1 << 24  # repeated squaring beyond this is pointless


def _int_pow(x, n: int):
    """x ** n for a static python int n via repeated squaring (pure VPU)."""
    if n == 0:
        return jnp.ones_like(x)
    neg = n < 0
    n = abs(n)
    result = None
    base = x
    while n:
        if n & 1:
            result = base if result is None else result * base
        n >>= 1
        if n:
            base = base * base
    if neg:
        result = 1.0 / result
    return result


def _is_int(e: float) -> bool:
    return math.isfinite(e) and float(e).is_integer() and abs(e) <= _INT_POW_CAP


def _is_half(e: float) -> bool:
    return math.isfinite(e) and float(2.0 * e).is_integer() and abs(e) <= _INT_POW_CAP


def _half_pow(x, sqrt_x, e: float):
    """x ** e for e a multiple of 0.5 (no log/exp; sqrt_x is a shared sqrt(x))."""
    if _is_int(e):
        return _int_pow(x, int(e))
    k = int(math.floor(e))          # e = k + 0.5
    return _int_pow(x, k) * sqrt_x


def _single_pow(x, e: float):
    if _is_int(e):
        return _int_pow(x, int(e))
    if _is_half(e):
        return _half_pow(x, jnp.sqrt(x), e)
    return jnp.exp(e * jnp.log(x))


def _poly_eval(x, a, b):
    """x**a + x**b, specialized at trace time to minimize EUP transcendentals."""
    a, b = float(a), float(b)
    a_cheap = _is_int(a) or _is_half(a)
    b_cheap = _is_int(b) or _is_half(b)
    if a_cheap and b_cheap:
        # <= 1 sqrt, zero log/exp  (e.g. a=2.5, b=0.5 -> x*x*s + s)
        need_sqrt = not (_is_int(a) and _is_int(b))
        s = jnp.sqrt(x) if need_sqrt else None
        return _half_pow(x, s, a) + _half_pow(x, s, b)
    d = a - b
    if math.isfinite(d) and _is_int(d):
        # x**hi = x**lo * x**(hi-lo): one pow + integer muls
        lo, hi = (b, a) if a >= b else (a, b)
        p = _single_pow(x, lo)
        return p * _int_pow(x, int(hi - lo)) + p
    if a_cheap or b_cheap:
        # one cheap pow + one general pow: <= 2 transcendentals
        return _single_pow(x, a) + _single_pow(x, b)
    # general: shared log -> 1 log + 2 exps (vs 2 logs + 2 exps for two pows)
    l = jnp.log(x)
    return jnp.exp(a * l) + jnp.exp(b * l)


# ---------------------------------------------------------------------------
# Kernel + wrapper
# ---------------------------------------------------------------------------

def _make_kernel(a: float, b: float):
    def kernel(x_ref, o_ref):
        # f32 compute (safe on v5e's non-bf16 vector units, matches torch f32)
        x = x_ref[...].astype(jnp.float32)
        o_ref[...] = _poly_eval(x, a, b).astype(o_ref.dtype)
    return kernel


def _tpu_kind() -> str:
    try:
        return jax.devices()[0].device_kind.lower()
    except Exception:
        return ""


def _run_slab(x2d, a, b, dtype, block_rows, lane, vmem_limit):
    rows = x2d.shape[0]
    grid = (pl.cdiv(rows, block_rows),)
    return pl.pallas_call(
        _make_kernel(a, b),
        out_shape=jax.ShapeDtypeStruct((rows, lane), dtype),
        grid=grid,
        in_specs=[pl.BlockSpec((block_rows, lane), lambda i: (i, 0))],
        out_specs=pl.BlockSpec((block_rows, lane), lambda i: (i, 0)),
        compiler_params=pltpu.CompilerParams(
            dimension_semantics=("parallel",),   # shards grid across TCs (v7x)
            vmem_limit_bytes=vmem_limit),
    )(x2d)


def polynomial_forward(x, a, b):
    """x: arbitrary-shape float array (e.g. NCHW). a, b: static python floats."""
    orig_shape = x.shape
    dtype = x.dtype
    itemsize = jnp.dtype(dtype).itemsize
    flat = x.reshape(-1)
    n = flat.shape[0]

    kind = _tpu_kind()
    is_v7 = "v7" in kind
    # Per-block byte target for the input stream: ~2 MiB is the measured
    # roofline knee on v5e/v6e (and fits their default scoped VMEM double-
    # buffered); v7x's 3.2 TB/s makes 2 MiB steps overhead-dominated -> 4 MiB
    # with a raised scoped-VMEM limit (64 MiB physical).
    block_bytes = (4 << 20) if is_v7 else (2 << 20)
    vmem_limit = (48 << 20) if is_v7 else None
    num_cores = 2 if is_v7 else 1

    # Lane-dense width: widest multiple of 128 that divides n (no tail at all),
    # otherwise widest that still leaves >= 8 full rows (tiny tail outside).
    lane = None
    for cand in (2048, 1024, 512, 256, 128):
        if n >= cand and n % cand == 0:
            lane = cand
            break
    if lane is None:
        for cand in (2048, 1024, 512, 256, 128):
            if n // cand >= 8:
                lane = cand
                break
    if lane is None:
        # Tiny input (< ~1 KiB of rows): a pipelined kernel launch isn't worth
        # it; evaluate directly with the same specialized math.
        out = _poly_eval(flat.astype(jnp.float32), a, b).astype(dtype)
        return out.reshape(orig_shape)

    n_main = (n // lane) * lane
    rows = n_main // lane
    if n_main == n:
        main = flat.reshape(rows, lane)
    else:
        main = flat[:n_main].reshape(rows, lane)

    # Block rows: multiple of 8 (layout constraint) sized to ~block_bytes of
    # real input bytes, preferring an exact divisor of rows (no ragged tile).
    target_rows = max(8, (block_bytes // (lane * itemsize)) // 8 * 8)
    if rows <= target_rows:
        block_rows = rows
        # v7x has 2 TensorCores: give each a block when there is enough data
        # to matter, otherwise half the chip idles on a grid of length 1.
        if num_cores > 1 and rows >= 16 and rows * lane * itemsize >= (1 << 20):
            half = ((-(-rows // 2)) + 7) // 8 * 8
            if 0 < half < rows:
                block_rows = half
    else:
        block_rows = target_rows
        if rows % block_rows != 0:
            for cand in range(block_rows, max(block_rows // 2, 8) - 1, -8):
                if rows % cand == 0:
                    block_rows = cand
                    break

    main_out = _run_slab(main, a, b, dtype, block_rows, lane, vmem_limit)

    if n_main == n:
        return main_out.reshape(orig_shape)

    # Rare non-divisible path: only the < lane-sized tail runs outside the
    # kernel; one output-sized concat instead of full pad + slice round trips.
    # TODO(synk): could be folded into the kernel with a masked final store.
    tail = _poly_eval(flat[n_main:].astype(jnp.float32), a, b).astype(dtype)
    return jnp.concatenate([main_out.reshape(-1), tail]).reshape(orig_shape)


if __name__ == "__main__":
    # Module parameters (PolynomialClass(a, b))
    a_param = 2.0
    b_param = 3.0

    key = jax.random.PRNGKey(0)
    # Small NCHW-like input; positive values so fractional powers are well
    # defined (matches torch semantics for these inputs).
    x = jax.random.uniform(key, (2, 4, 16, 16), dtype=jnp.float32,
                           minval=0.1, maxval=2.0)

    # 1) Integer-exponent fast path (pure VPU, exact for negative x too)
    y = polynomial_forward(x, a_param, b_param)
    y = jax.block_until_ready(y)
    y_ref = x ** a_param + x ** b_param
    assert y.shape == x.shape
    assert jnp.allclose(y, y_ref, rtol=1e-5, atol=1e-5)

    # 2) Half-integer exponents (single sqrt, zero log/exp)
    y2 = jax.block_until_ready(polynomial_forward(x, 2.5, 0.5))
    assert jnp.allclose(y2, x ** 2.5 + x ** 0.5, rtol=1e-5, atol=1e-5)

    # 3) General exponents (shared-log path)
    y3 = jax.block_until_ready(polynomial_forward(x, 2.7, 0.3))
    assert jnp.allclose(y3, x ** 2.7 + x ** 0.3, rtol=1e-5, atol=1e-5)

    print("KERNEL_OK")
</pallas_src>

<mosaic_0001>
module attributes {stable_mosaic.version = 11 : i64} {
  func.func @kernel(%arg0: i32, %arg1: memref<1x2048xf32, #tpu.memory_space<vmem>>, %arg2: memref<1x2048xf32, #tpu.memory_space<vmem>>) attributes {dimension_semantics = [#tpu.dimension_semantics<parallel>], iteration_bounds = array<i64: 1>, scalar_prefetch = 0 : i64, scratch_operands = 0 : i64, tpu.core_type = #tpu.core_type<tc>, window_params = [{transform_indices = @transform_0, window_bounds = array<i64: 1, 2048>}, {transform_indices = @transform_1, window_bounds = array<i64: 1, 2048>}]} {
    %c0 = arith.constant 0 : index
    %c0_0 = arith.constant 0 : index
    %0 = vector.load %arg1[%c0, %c0_0] : memref<1x2048xf32, #tpu.memory_space<vmem>>, vector<1x2048xf32>
    %1 = arith.mulf %0, %0 : vector<1x2048xf32>
    %2 = arith.mulf %0, %0 : vector<1x2048xf32>
    %3 = arith.mulf %0, %2 : vector<1x2048xf32>
    %4 = arith.addf %1, %3 : vector<1x2048xf32>
    %c0_1 = arith.constant 0 : index
    %c0_2 = arith.constant 0 : index
    %5 = vector.load %arg2[%c0_1, %c0_2] : memref<1x2048xf32, #tpu.memory_space<vmem>>, vector<1x2048xf32>
    tpu.vector_store %arg2[%c0_1, %c0_2], %4 {strides = array<i32>} : memref<1x2048xf32, #tpu.memory_space<vmem>>, vector<1x2048xf32>,
    return
  }
  func.func @transform_0(%arg0: i32) -> (i32, i32) {
    %c0_i32 = arith.constant 0 : i32
    %c0_i32_0 = arith.constant 0 : i32
    return %arg0, %c0_i32 : i32, i32
  }
  func.func @transform_1(%arg0: i32) -> (i32, i32) {
    %c0_i32 = arith.constant 0 : i32
    %c0_i32_0 = arith.constant 0 : i32
    return %arg0, %c0_i32 : i32, i32
  }
}

</mosaic_0001>

<bundles_post_ra>
// kernel: tpu_custom_call.1
= control target key start
LH: loop header
LB: loop body
LE: loop exit
PB: predicated region body
PF: predicated region fallthrough
CT: control target
= control target key end

     0   :  { %6 = vsyncpa [#allocation3], 0  ;;  %s132_s0 = inlined_call_operand.hbm [shape: f32[1,2048], index: 0, kind: input, shape index: {}]   ;;  %s133_s1 = inlined_call_operand.hbm [shape: f32[1,2048], index: 1, kind: output, shape index: {}]  }
   0x1   :  { %7 = vsyncpa [#allocation4], 0  ;;  %s96_s6 = smov [#allocation2]   ;;  %s48_s10 = scalar_lea.hbm %s132_s0, 256 }
   0x2   :  { %s14_s7 = sshll.u32 %s96_s6, 4  ;;  %p49_p0 = scmp.ne.s32.totalorder %s132_s0, %s48_s10  ;;  %s15_s7 = int_to_ptr.vmem [resolvable:$true] %s14_s7 }
   0x3   :  { %p52_p1 = scmp.lt.u32.totalorder %s48_s10, %s132_s0 }
   0x5   :  { %p54_p2 = pnand %p52_p1, %p49_p0 }
   0x7   :  { %57 = shalt.err (!%p54_p2)
}
   0x8   :  { %s58_s15 = scalar_lea.vmem %s15_s7, 256  ;;  %p63_p4 = scmp.lt.s32.totalorder %s15_s7, %s15_s7 }
   0x9   :  { %p59_p3 = scmp.ne.s32.totalorder %s15_s7, %s58_s15  ;;  %p64_p5 = scmp.lt.s32.totalorder %s58_s15, %s58_s15 }
   0xb   :  { %p65_p6 = por %p64_p5, %p63_p4 }
   0xd   :  { %p66_p7 = pnand %p65_p6, %p59_p3 }
   0xf   :  { %69 = shalt.err (!%p66_p7)
}
  0x10   :  { %17 = dma.hbm_to_vmem [thread:$0]  %s132_s0, 256, %s15_s7, [#allocation3]  }
  0x11   :  { %92 = dma.done.wait [#allocation3], 256  }
  0x12   :  { %93 = vsyncadd [#allocation3], 4294967040  ;;  %v21_v0 = vld [vmem:[#allocation2] sm:$0xff]  ;;  %v22_v1 = vld [vmem:[#allocation2 + $0x8] sm:$0xff]  ;;  %s97_s18 = smov [#allocation5]  }
  0x13   :  { %v23_v2 = vmul.f32 %v21_v0, %v21_v0  ;;  %v24_v3 = vmul.f32 %v22_v1, %v22_v1  ;;  %s37_s19 = sshll.u32 %s97_s18, 4  ;;  %s38_s19 = int_to_ptr.vmem [resolvable:$true] %s37_s19 }
  0x14   :  { %s70_s20 = scalar_lea.vmem %s38_s19, 256  ;;  %p75_p9 = scmp.lt.s32.totalorder %s38_s19, %s38_s19 }
  0x15   :  { %v25_v4 = vmul.f32 %v23_v2, %v21_v0  ;;  %v26_v5 = vmul.f32 %v24_v3, %v22_v1  ;;  %p71_p8 = scmp.ne.s32.totalorder %s38_s19, %s70_s20  ;;  %p76_p10 = scmp.lt.s32.totalorder %s70_s20, %s70_s20 }
  0x17   :  { %v27_v6 = vadd.f32 %v25_v4, %v23_v2  ;;  %v28_v7 = vadd.f32 %v26_v5, %v24_v3  ;;  %p77_p11 = por %p76_p10, %p75_p9 }
  0x19   :  { %29 = vst [vmem:[#allocation5] sm:$0xff] %v27_v6  ;;  %30 = vst [vmem:[#allocation5 + $0x8] sm:$0xff] %v28_v7  ;;  %p78_p12 = pnand %p77_p11, %p71_p8 }
  0x1b   :  { %81 = shalt.err (!%p78_p12)
}
  0x1c   :  { %s82_s22 = scalar_lea.hbm %s133_s1, 256 }
  0x1d   :  { %p83_p13 = scmp.ne.s32.totalorder %s133_s1, %s82_s22  ;;  %p86_p0 = scmp.lt.u32.totalorder %s82_s22, %s133_s1 }
  0x1f   :  { %p88_p1 = pnand %p86_p0, %p83_p13 }
  0x21   :  { %91 = shalt.err (!%p88_p1)
}
  0x22   :  { %40 = dma.vmem_to_hbm [thread:$0]  %s38_s19, 256, %s133_s1, [#allocation4]  }
  0x23   :  { %94 = dma.done.wait [#allocation4], 256  }
  0x24   :  { %95 = vsyncadd [#allocation4], 4294967040 }
  0x25   :  { %44 = vsyncpa [#allocation3], 1 }
  0x26   :  { %45 = vsyncpa [#allocation4], 1 }

</bundles_post_ra>
